<compile_context>
chip_gen: v6e
topology: v6e:2x2x1
jax: 0.10.0
libtpu: 0.0.40
codegen_flags: <defaults>
</compile_context>

<pallas_src>
from types import SimpleNamespace

import jax
import jax.numpy as jnp
from jax import lax
from jax.experimental import pallas as pl
from jax.experimental.pallas import tpu as pltpu

EPSILON = 1e-6          # solver.py: BatchNorm1d(..., eps=EPSILON)
_LANE = 128
_SUBLANE = 8
_SMALL_BATCH_STATS = 16  # n_pad <= this -> XLU sublane-sum stats instead of MXU


def _round_up(a, m):
    return (a + m - 1) // m * m


def _make_kernel(num_layers, n_real, weights_are_bf16):
    """Refs: x_pad (n_pad, P), w_packed (L, P, P), gb_packed (2*(L+1), P), out (n_pad, P)."""

    def kernel(x_ref, w_ref, gb_ref, out_ref):
        x = x_ref[...].astype(jnp.float32)
        n_pad, p = x.shape
        inv_n = jnp.float32(1.0 / n_real)
        small = n_pad <= _SMALL_BATCH_STATS
        need_row_mask = n_pad != n_real   # static (trace-time) decision

        if need_row_mask:
            # Padded batch rows must stay exactly zero so they never perturb the
            # next layer's batch statistics.
            row_mask = lax.broadcasted_iota(jnp.int32, (n_pad, 1), 0) < n_real
        if not small:
            ones_row = jnp.ones((1, n_pad), dtype=jnp.float32)  # hoisted once

        def mask_rows(h):
            return jnp.where(row_mask, h, 0.0) if need_row_mask else h

        def colsum(h):
            if small:
                return jnp.sum(h, axis=0, keepdims=True)            # XLU
            return jnp.dot(ones_row, h, preferred_element_type=jnp.float32)  # MXU

        def batch_sums(h):
            """s = sum_n h, ss = sum_n h*h (padded rows are zero, so sums are exact)."""
            if small:
                s = jnp.sum(h, axis=0, keepdims=True)
                ss = jnp.sum(h * h, axis=0, keepdims=True)
            else:
                # Single MXU push/pop for BOTH reductions: (1,n) @ [h | h*h].
                both = jnp.dot(ones_row, jnp.concatenate([h, h * h], axis=1),
                               preferred_element_type=jnp.float32)
                s, ss = both[:, :p], both[:, p:]
            return s, ss

        def gamma_beta(i):
            return gb_ref[2 * i:2 * i + 1, :], gb_ref[2 * i + 1:2 * i + 2, :]

        # ---- Top-level BatchNorm1d(config.dim): centered variance ----------
        g0, b0 = gamma_beta(0)
        mean0 = colsum(x) * inv_n
        xc = mask_rows(x - mean0)                 # padded rows back to exact zero
        var0 = colsum(xc * xc) * inv_n
        scale0 = g0 * lax.rsqrt(var0 + EPSILON)   # padded lanes: gamma=0 -> 0
        x = mask_rows(xc * scale0 + b0)

        # ---- [Linear -> BN -> tanh] * (L-1), then Linear -> BN --------------
        for li in range(num_layers):
            w = w_ref[li]                                       # (P, P) slab
            if weights_are_bf16:
                h = jnp.dot(x.astype(jnp.bfloat16), w,
                            preferred_element_type=jnp.float32)
            else:
                h = jnp.dot(x, w, preferred_element_type=jnp.float32)
            # Linear bias elided on purpose: the training-mode BN below
            # subtracts the batch mean, cancelling any per-feature constant.

            g, b = gamma_beta(li + 1)
            s, ss = batch_sums(h)
            mean = s * inv_n
            var = jnp.maximum(ss * inv_n - mean * mean, 0.0)    # biased batch var
            scale = g * lax.rsqrt(var + EPSILON)
            shift = b - mean * scale
            x = mask_rows(h * scale + shift)                    # fused scale/shift
            if li < num_layers - 1:                             # last layer: activate=False
                x = jnp.tanh(x)

        out_ref[...] = x.astype(out_ref.dtype)

    return kernel


def _vmem_capacity_bytes():
    cap = 64 * 1024 * 1024  # conservative default (v7x per-TC VMEM)
    try:
        cap = int(getattr(pltpu.get_tpu_info(), "vmem_capacity_bytes", cap))
    except Exception:
        pass
    return cap


def _is_v5e():
    try:
        kind = jax.devices()[0].device_kind.lower()
        return ("v5 lite" in kind) or ("v5e" in kind) or ("v5litepod" in kind)
    except Exception:
        return False


def grad_u_network_forward(x, params, *, use_bf16_matmul=False):
    """params: {'bn0': (gamma, beta), 'layers': [(W, b, gamma, beta), ...]}.

    The per-layer Linear bias `b` is accepted (mirroring the PyTorch module)
    but never sent to the kernel: training-mode BatchNorm cancels it exactly.
    """
    layers = params["layers"]
    num_layers = len(layers)
    n, dim = x.shape
    widths = [dim] + [w.shape[1] for (w, _b, _g, _bt) in layers]
    out_dim = widths[-1]

    # Lane/sublane padding: feature axes -> 128-lane-dense slabs, batch -> x8.
    p = _round_up(max(widths + [_LANE]), _LANE)
    n_pad = _round_up(n, _SUBLANE)

    if use_bf16_matmul and _is_v5e():
        # v5e's VPU has no bf16; in-kernel casts cost VALU packs for zero MXU gain.
        use_bf16_matmul = False

    x_pad = jnp.zeros((n_pad, p), jnp.float32).at[:n, :dim].set(x.astype(jnp.float32))

    # Packed parameters: 3 kernel inputs total instead of 3 per layer.
    w_dtype = jnp.bfloat16 if use_bf16_matmul else jnp.float32
    w_packed = jnp.zeros((num_layers, p, p), w_dtype)
    for li, (w, _b, _g, _bt) in enumerate(layers):
        cin, cout = w.shape
        w_packed = w_packed.at[li, :cin, :cout].set(w.astype(w_dtype))

    gb_packed = jnp.zeros((2 * (num_layers + 1), p), jnp.float32)
    g0, b0 = params["bn0"]
    gb_packed = gb_packed.at[0, :dim].set(g0.reshape(-1))
    gb_packed = gb_packed.at[1, :dim].set(b0.reshape(-1))
    for li, (w, _b, g, bt) in enumerate(layers):
        cout = w.shape[1]
        gb_packed = gb_packed.at[2 * (li + 1), :cout].set(g.reshape(-1))
        gb_packed = gb_packed.at[2 * (li + 1) + 1, :cout].set(bt.reshape(-1))

    # Padding-aware VMEM accounting (lanes already x128, round sublanes to x8).
    itemsize_w = 2 if use_bf16_matmul else 4
    in_bytes = (n_pad * p * 4
                + num_layers * p * p * itemsize_w
                + _round_up(2 * (num_layers + 1), _SUBLANE) * p * 4)
    out_bytes = n_pad * p * 4
    act_bytes = 4 * n_pad * p * 4 + 2 * n_pad * p * 4   # ~4 live (n_pad,P) temps + [h|h*h]
    footprint = in_bytes + out_bytes + act_bytes

    cap = _vmem_capacity_bytes()
    if footprint > int(cap * 0.6):
        # TODO(synk): large-batch support needs a two-pass BN over a batch-tile
        # grid (pass 1 accumulates per-layer sum/sumsq into VMEM scratch with a
        # pl.when init on an "arbitrary" axis, pass 2 normalizes + matmuls with
        # activations staged through HBM).  Naive batch tiling would silently
        # switch to per-tile statistics, so refuse instead of faking it.
        raise NotImplementedError(
            "batch too large for single-pass, VMEM-resident training-mode BatchNorm")
    vmem_limit = int(min(max(2 * footprint + (8 << 20), 32 << 20), cap * 3 // 4))

    flops = num_layers * 2 * n_pad * p * p + (num_layers + 1) * 4 * n_pad * p
    transcendentals = (num_layers - 1) * n_pad * p
    bytes_accessed = in_bytes + out_bytes

    vmem_spec = pl.BlockSpec(memory_space=pltpu.MemorySpace.VMEM)

    # TODO(synk): v7x has 2 TensorCores; a single forward is gridless (one core).
    # Batching independent problem instances over grid=(I,) with
    # dimension_semantics=("parallel",) (or block-diagonal lane packing of
    # several instances) would use both cores and amortize launch overhead.
    out_pad = pl.pallas_call(
        _make_kernel(num_layers, n, use_bf16_matmul),
        out_shape=jax.ShapeDtypeStruct((n_pad, p), jnp.float32),
        in_specs=[vmem_spec, vmem_spec, vmem_spec],
        out_specs=vmem_spec,
        compiler_params=pltpu.CompilerParams(vmem_limit_bytes=vmem_limit),
        cost_estimate=pl.CostEstimate(
            flops=int(flops),
            transcendentals=int(transcendentals),
            bytes_accessed=int(bytes_accessed)),
    )(x_pad, w_packed, gb_packed)

    return out_pad[:n, :out_dim]


def init_params(config, key):
    """Deterministic parameter init mirroring the PyTorch module __init__."""
    dim = config.dim
    hiddens = config.num_hiddens
    params = {}
    # Top-level BatchNorm1d(dim): gamma=1, beta=0 (PyTorch default init).
    params["bn0"] = (jnp.ones((1, dim), jnp.float32), jnp.zeros((1, dim), jnp.float32))

    layers = []
    for i in range(1, len(hiddens)):
        cin, cout = hiddens[i - 1], hiddens[i]
        key, kw, kb = jax.random.split(key, 3)
        std = 5.0 / jnp.sqrt(float(cin + cout))
        # PyTorch Linear weight is (cout, cin) with y = x @ W.T; store (cin, cout).
        w = (jax.random.normal(kw, (cout, cin), jnp.float32) * std).T
        bound = 1.0 / jnp.sqrt(float(cin))
        b = jax.random.uniform(kb, (1, cout), jnp.float32, -bound, bound)
        gamma = jnp.ones((1, cout), jnp.float32)
        beta = jnp.zeros((1, cout), jnp.float32)
        layers.append((w, b, gamma, beta))
    params["layers"] = layers
    return params


def reference_forward(x, params):
    """Pure-JAX reference with full PyTorch semantics (Linear bias INCLUDED,
    centered biased variance) — proves the kernel's bias elision, lane padding
    and fused stats are exact up to fp rounding."""

    def bn(h, gamma, beta):
        mean = jnp.mean(h, axis=0, keepdims=True)
        var = jnp.mean((h - mean) ** 2, axis=0, keepdims=True)
        return (h - mean) * lax.rsqrt(var + EPSILON) * gamma + beta

    g0, b0 = params["bn0"]
    h = bn(x.astype(jnp.float32), g0, b0)
    num_layers = len(params["layers"])
    for li, (w, b, g, bt) in enumerate(params["layers"]):
        h = h @ w + b
        h = bn(h, g, bt)
        if li < num_layers - 1:
            h = jnp.tanh(h)
    return h


if __name__ == "__main__":
    # Small config consistent with the module: num_hiddens[0] == config.dim.
    config = SimpleNamespace(dim=16, num_hiddens=[16, 32, 32, 8])

    key = jax.random.PRNGKey(0)
    key, kx, kp = jax.random.split(key, 3)
    x = jax.random.normal(kx, (8, config.dim), jnp.float32)  # batch=8, dim=16

    params = init_params(config, kp)

    ref = reference_forward(x, params)  # full PyTorch math (bias included)

    # Default f32 path: must match the PyTorch-semantics reference tightly.
    out = jax.block_until_ready(grad_u_network_forward(x, params))
    assert out.shape == (8, config.num_hiddens[-1])
    assert jnp.allclose(out, ref, atol=1e-4, rtol=1e-4), "f32 kernel mismatch vs reference"

    # bf16-operand MXU path (v6e/v7x; auto-disabled on v5e): loose sanity check.
    out_bf16 = jax.block_until_ready(
        grad_u_network_forward(x, params, use_bf16_matmul=True))
    assert bool(jnp.all(jnp.isfinite(out_bf16)))
    assert float(jnp.max(jnp.abs(out_bf16 - ref))) < 0.3, "bf16 kernel diverged"

    print("KERNEL_OK")
</pallas_src>

<mosaic_0001>
module attributes {stable_mosaic.version = 11 : i64} {
  func.func @kernel(%arg0: memref<8x128xf32, #tpu.memory_space<vmem>>, %arg1: memref<3x128x128xf32, #tpu.memory_space<vmem>>, %arg2: memref<8x128xf32, #tpu.memory_space<vmem>>, %arg3: memref<8x128xf32, #tpu.memory_space<vmem>>) attributes {dimension_semantics = [], scalar_prefetch = 0 : i64, scratch_operands = 0 : i64, tpu.core_type = #tpu.core_type<tc>} {
    %c0 = arith.constant 0 : index
    %c0_0 = arith.constant 0 : index
    %0 = vector.load %arg0[%c0, %c0_0] : memref<8x128xf32, #tpu.memory_space<vmem>>, vector<8x128xf32>
    %c0_1 = arith.constant 0 : index
    %c0_2 = arith.constant 0 : index
    %1 = vector.load %arg2[%c0_1, %c0_2] : memref<8x128xf32, #tpu.memory_space<vmem>>, vector<1x128xf32>
    %c1 = arith.constant 1 : index
    %c0_3 = arith.constant 0 : index
    %2 = vector.load %arg2[%c1, %c0_3] : memref<8x128xf32, #tpu.memory_space<vmem>>, vector<1x128xf32>
    %cst = arith.constant dense<0.000000e+00> : vector<128xf32>
    %3 = vector.multi_reduction <add>, %0, %cst [0] : vector<8x128xf32> to vector<128xf32>
    %4 = vector.shape_cast %3 : vector<128xf32> to vector<1x128xf32>
    %cst_4 = arith.constant 1.250000e-01 : f32
    %5 = vector.broadcast %cst_4 : f32 to vector<1x128xf32>
    %6 = arith.mulf %4, %5 : vector<1x128xf32>
    %7 = vector.broadcast %6 : vector<1x128xf32> to vector<8x128xf32>
    %8 = arith.subf %0, %7 : vector<8x128xf32>
    %9 = arith.mulf %8, %8 : vector<8x128xf32>
    %cst_5 = arith.constant dense<0.000000e+00> : vector<128xf32>
    %10 = vector.multi_reduction <add>, %9, %cst_5 [0] : vector<8x128xf32> to vector<128xf32>
    %11 = vector.shape_cast %10 : vector<128xf32> to vector<1x128xf32>
    %cst_6 = arith.constant 1.250000e-01 : f32
    %12 = vector.broadcast %cst_6 : f32 to vector<1x128xf32>
    %13 = arith.mulf %11, %12 : vector<1x128xf32>
    %cst_7 = arith.constant 9.99999997E-7 : f32
    %14 = vector.broadcast %cst_7 : f32 to vector<1x128xf32>
    %15 = arith.addf %13, %14 : vector<1x128xf32>
    %16 = math.rsqrt %15 : vector<1x128xf32>
    %17 = arith.mulf %1, %16 : vector<1x128xf32>
    %18 = vector.broadcast %17 : vector<1x128xf32> to vector<8x128xf32>
    %19 = arith.mulf %8, %18 : vector<8x128xf32>
    %20 = vector.broadcast %2 : vector<1x128xf32> to vector<8x128xf32>
    %21 = arith.addf %19, %20 : vector<8x128xf32>
    %c0_8 = arith.constant 0 : index
    %c0_9 = arith.constant 0 : index
    %c0_10 = arith.constant 0 : index
    %22 = vector.load %arg1[%c0_8, %c0_9, %c0_10] : memref<3x128x128xf32, #tpu.memory_space<vmem>>, vector<1x128x128xf32>
    %23 = vector.shape_cast %22 : vector<1x128x128xf32> to vector<128x128xf32>
    %cst_11 = arith.constant dense<0.000000e+00> : vector<8x128xf32>
    %24 = tpu.matmul %21, %23, %cst_11 {dimension_numbers = #tpu.dot_dimension_numbers<[1], [0], [0], [1], [0, 0, 1, 1], [], []>} : vector<8x128xf32>, vector<128x128xf32>, vector<8x128xf32> -> vector<8x128xf32>
    %c2 = arith.constant 2 : index
    %c0_12 = arith.constant 0 : index
    %25 = vector.load %arg2[%c2, %c0_12] : memref<8x128xf32, #tpu.memory_space<vmem>>, vector<1x128xf32>
    %c3 = arith.constant 3 : index
    %c0_13 = arith.constant 0 : index
    %26 = vector.load %arg2[%c3, %c0_13] : memref<8x128xf32, #tpu.memory_space<vmem>>, vector<1x128xf32>
    %cst_14 = arith.constant dense<0.000000e+00> : vector<128xf32>
    %27 = vector.multi_reduction <add>, %24, %cst_14 [0] : vector<8x128xf32> to vector<128xf32>
    %28 = vector.shape_cast %27 : vector<128xf32> to vector<1x128xf32>
    %29 = arith.mulf %24, %24 : vector<8x128xf32>
    %cst_15 = arith.constant dense<0.000000e+00> : vector<128xf32>
    %30 = vector.multi_reduction <add>, %29, %cst_15 [0] : vector<8x128xf32> to vector<128xf32>
    %31 = vector.shape_cast %30 : vector<128xf32> to vector<1x128xf32>
    %cst_16 = arith.constant 1.250000e-01 : f32
    %32 = vector.broadcast %cst_16 : f32 to vector<1x128xf32>
    %33 = arith.mulf %28, %32 : vector<1x128xf32>
    %cst_17 = arith.constant 1.250000e-01 : f32
    %34 = vector.broadcast %cst_17 : f32 to vector<1x128xf32>
    %35 = arith.mulf %31, %34 : vector<1x128xf32>
    %36 = arith.mulf %33, %33 : vector<1x128xf32>
    %37 = arith.subf %35, %36 : vector<1x128xf32>
    %cst_18 = arith.constant 0.000000e+00 : f32
    %38 = vector.broadcast %cst_18 : f32 to vector<1x128xf32>
    %39 = arith.maximumf %37, %38 : vector<1x128xf32>
    %cst_19 = arith.constant 9.99999997E-7 : f32
    %40 = vector.broadcast %cst_19 : f32 to vector<1x128xf32>
    %41 = arith.addf %39, %40 : vector<1x128xf32>
    %42 = math.rsqrt %41 : vector<1x128xf32>
    %43 = arith.mulf %25, %42 : vector<1x128xf32>
    %44 = arith.mulf %33, %43 : vector<1x128xf32>
    %45 = arith.subf %26, %44 : vector<1x128xf32>
    %46 = vector.broadcast %43 : vector<1x128xf32> to vector<8x128xf32>
    %47 = arith.mulf %24, %46 : vector<8x128xf32>
    %48 = vector.broadcast %45 : vector<1x128xf32> to vector<8x128xf32>
    %49 = arith.addf %47, %48 : vector<8x128xf32>
    %50 = math.tanh %49 : vector<8x128xf32>
    %c1_20 = arith.constant 1 : index
    %c0_21 = arith.constant 0 : index
    %c0_22 = arith.constant 0 : index
    %51 = vector.load %arg1[%c1_20, %c0_21, %c0_22] : memref<3x128x128xf32, #tpu.memory_space<vmem>>, vector<1x128x128xf32>
    %52 = vector.shape_cast %51 : vector<1x128x128xf32> to vector<128x128xf32>
    %cst_23 = arith.constant dense<0.000000e+00> : vector<8x128xf32>
    %53 = tpu.matmul %50, %52, %cst_23 {dimension_numbers = #tpu.dot_dimension_numbers<[1], [0], [0], [1], [0, 0, 1, 1], [], []>} : vector<8x128xf32>, vector<128x128xf32>, vector<8x128xf32> -> vector<8x128xf32>
    %c4 = arith.constant 4 : index
    %c0_24 = arith.constant 0 : index
    %54 = vector.load %arg2[%c4, %c0_24] : memref<8x128xf32, #tpu.memory_space<vmem>>, vector<1x128xf32>
    %c5 = arith.constant 5 : index
    %c0_25 = arith.constant 0 : index
    %55 = vector.load %arg2[%c5, %c0_25] : memref<8x128xf32, #tpu.memory_space<vmem>>, vector<1x128xf32>
    %cst_26 = arith.constant dense<0.000000e+00> : vector<128xf32>
    %56 = vector.multi_reduction <add>, %53, %cst_26 [0] : vector<8x128xf32> to vector<128xf32>
    %57 = vector.shape_cast %56 : vector<128xf32> to vector<1x128xf32>
    %58 = arith.mulf %53, %53 : vector<8x128xf32>
    %cst_27 = arith.constant dense<0.000000e+00> : vector<128xf32>
    %59 = vector.multi_reduction <add>, %58, %cst_27 [0] : vector<8x128xf32> to vector<128xf32>
    %60 = vector.shape_cast %59 : vector<128xf32> to vector<1x128xf32>
    %cst_28 = arith.constant 1.250000e-01 : f32
    %61 = vector.broadcast %cst_28 : f32 to vector<1x128xf32>
    %62 = arith.mulf %57, %61 : vector<1x128xf32>
    %cst_29 = arith.constant 1.250000e-01 : f32
    %63 = vector.broadcast %cst_29 : f32 to vector<1x128xf32>
    %64 = arith.mulf %60, %63 : vector<1x128xf32>
    %65 = arith.mulf %62, %62 : vector<1x128xf32>
    %66 = arith.subf %64, %65 : vector<1x128xf32>
    %cst_30 = arith.constant 0.000000e+00 : f32
    %67 = vector.broadcast %cst_30 : f32 to vector<1x128xf32>
    %68 = arith.maximumf %66, %67 : vector<1x128xf32>
    %cst_31 = arith.constant 9.99999997E-7 : f32
    %69 = vector.broadcast %cst_31 : f32 to vector<1x128xf32>
    %70 = arith.addf %68, %69 : vector<1x128xf32>
    %71 = math.rsqrt %70 : vector<1x128xf32>
    %72 = arith.mulf %54, %71 : vector<1x128xf32>
    %73 = arith.mulf %62, %72 : vector<1x128xf32>
    %74 = arith.subf %55, %73 : vector<1x128xf32>
    %75 = vector.broadcast %72 : vector<1x128xf32> to vector<8x128xf32>
    %76 = arith.mulf %53, %75 : vector<8x128xf32>
    %77 = vector.broadcast %74 : vector<1x128xf32> to vector<8x128xf32>
    %78 = arith.addf %76, %77 : vector<8x128xf32>
    %79 = math.tanh %78 : vector<8x128xf32>
    %c2_32 = arith.constant 2 : index
    %c0_33 = arith.constant 0 : index
    %c0_34 = arith.constant 0 : index
    %80 = vector.load %arg1[%c2_32, %c0_33, %c0_34] : memref<3x128x128xf32, #tpu.memory_space<vmem>>, vector<1x128x128xf32>
    %81 = vector.shape_cast %80 : vector<1x128x128xf32> to vector<128x128xf32>
    %cst_35 = arith.constant dense<0.000000e+00> : vector<8x128xf32>
    %82 = tpu.matmul %79, %81, %cst_35 {dimension_numbers = #tpu.dot_dimension_numbers<[1], [0], [0], [1], [0, 0, 1, 1], [], []>} : vector<8x128xf32>, vector<128x128xf32>, vector<8x128xf32> -> vector<8x128xf32>
    %c6 = arith.constant 6 : index
    %c0_36 = arith.constant 0 : index
    %83 = vector.load %arg2[%c6, %c0_36] : memref<8x128xf32, #tpu.memory_space<vmem>>, vector<1x128xf32>
    %c7 = arith.constant 7 : index
    %c0_37 = arith.constant 0 : index
    %84 = vector.load %arg2[%c7, %c0_37] : memref<8x128xf32, #tpu.memory_space<vmem>>, vector<1x128xf32>
    %cst_38 = arith.constant dense<0.000000e+00> : vector<128xf32>
    %85 = vector.multi_reduction <add>, %82, %cst_38 [0] : vector<8x128xf32> to vector<128xf32>
    %86 = vector.shape_cast %85 : vector<128xf32> to vector<1x128xf32>
    %87 = arith.mulf %82, %82 : vector<8x128xf32>
    %cst_39 = arith.constant dense<0.000000e+00> : vector<128xf32>
    %88 = vector.multi_reduction <add>, %87, %cst_39 [0] : vector<8x128xf32> to vector<128xf32>
    %89 = vector.shape_cast %88 : vector<128xf32> to vector<1x128xf32>
    %cst_40 = arith.constant 1.250000e-01 : f32
    %90 = vector.broadcast %cst_40 : f32 to vector<1x128xf32>
    %91 = arith.mulf %86, %90 : vector<1x128xf32>
    %cst_41 = arith.constant 1.250000e-01 : f32
    %92 = vector.broadcast %cst_41 : f32 to vector<1x128xf32>
    %93 = arith.mulf %89, %92 : vector<1x128xf32>
    %94 = arith.mulf %91, %91 : vector<1x128xf32>
    %95 = arith.subf %93, %94 : vector<1x128xf32>
    %cst_42 = arith.constant 0.000000e+00 : f32
    %96 = vector.broadcast %cst_42 : f32 to vector<1x128xf32>
    %97 = arith.maximumf %95, %96 : vector<1x128xf32>
    %cst_43 = arith.constant 9.99999997E-7 : f32
    %98 = vector.broadcast %cst_43 : f32 to vector<1x128xf32>
    %99 = arith.addf %97, %98 : vector<1x128xf32>
    %100 = math.rsqrt %99 : vector<1x128xf32>
    %101 = arith.mulf %83, %100 : vector<1x128xf32>
    %102 = arith.mulf %91, %101 : vector<1x128xf32>
    %103 = arith.subf %84, %102 : vector<1x128xf32>
    %104 = vector.broadcast %101 : vector<1x128xf32> to vector<8x128xf32>
    %105 = arith.mulf %82, %104 : vector<8x128xf32>
    %106 = vector.broadcast %103 : vector<1x128xf32> to vector<8x128xf32>
    %107 = arith.addf %105, %106 : vector<8x128xf32>
    %c0_44 = arith.constant 0 : index
    %c0_45 = arith.constant 0 : index
    %108 = vector.load %arg3[%c0_44, %c0_45] : memref<8x128xf32, #tpu.memory_space<vmem>>, vector<8x128xf32>
    tpu.vector_store %arg3[%c0_44, %c0_45], %107 {strides = array<i32>} : memref<8x128xf32, #tpu.memory_space<vmem>>, vector<8x128xf32>,
    return
  }
}

</mosaic_0001>

<bundles_post_ra>
// kernel: tpu_custom_call.1
= control target key start
LH: loop header
LB: loop body
LE: loop exit
PB: predicated region body
PF: predicated region fallthrough
CT: control target
= control target key end

     0   :  { %8 = vsyncpa [#allocation3], 0  ;;  %s834_s0 = inlined_call_operand.hbm [shape: f32[8,128], index: 0, kind: input, shape index: {}]   ;;  %s835_s1 = inlined_call_operand.hbm [shape: f32[3,128,128], index: 1, kind: input, shape index: {}]   ;;  %s836_s2 = inlined_call_operand.hbm [shape: f32[8,128], index: 2, kind: input, shape index: {}]   ;;  %s837_s3 = inlined_call_operand.hbm [shape: f32[8,128], index: 3, kind: output, shape index: {}]  }
   0x1   :  { %9 = vsyncpa [#allocation6], 0 }
   0x2   :  { %10 = vsyncpa [#allocation4], 0  ;;  %s731_s12 = smov [#allocation5]  }
   0x3   :  { %s26_s13 = sshll.u32 %s731_s12, 4  ;;  %s27_s13 = int_to_ptr.vmem [resolvable:$true] %s26_s13 }
   0x4   :  { %s653_s14 = scalar_lea.vmem %s27_s13, 6144  ;;  %p658_p1 = scmp.lt.s32.totalorder %s27_s13, %s27_s13 }
   0x5   :  { %p654_p0 = scmp.ne.s32.totalorder %s27_s13, %s653_s14  ;;  %p659_p2 = scmp.lt.s32.totalorder %s653_s14, %s653_s14 }
   0x7   :  { %p660_p3 = por %p659_p2, %p658_p1 }
   0x9   :  { %p661_p4 = pnand %p660_p3, %p654_p0 }
   0xb   :  { %664 = shalt.err (!%p661_p4)
}
   0xc   :  { %s732_s15 = smov 128   ;;  %s733_s16 = smov 8  }
   0xd   :  { %32 = dma.hbm_to_vmem [thread:$0]  %s835_s1, 6144, %s27_s13, [#allocation6], %s732_s15, %s732_s15, %s733_s16  }
   0xe   :  { %s734_s19 = smov [#allocation2]   ;;  %s735_s21 = smov [#allocation7]  }
   0xf   :  { %s17_s20 = sshll.u32 %s734_s19, 4  ;;  %s39_s22 = sshll.u32 %s735_s21, 4  ;;  %s18_s20 = int_to_ptr.vmem [resolvable:$true] %s17_s20  ;;  %s40_s22 = int_to_ptr.vmem [resolvable:$true] %s39_s22 }
  0x10   :  { %s673_s23 = scalar_lea.vmem %s18_s20, 128  ;;  %p678_p6 = scmp.lt.s32.totalorder %s18_s20, %s18_s20 }
  0x11   :  { %p674_p5 = scmp.ne.s32.totalorder %s18_s20, %s673_s23  ;;  %p679_p7 = scmp.lt.s32.totalorder %s673_s23, %s673_s23 }
  0x13   :  { %p680_p8 = por %p679_p7, %p678_p6 }
  0x15   :  { %p681_p9 = pnand %p680_p8, %p674_p5 }
  0x17   :  { %684 = shalt.err (!%p681_p9)
}
  0x18   :  { %20 = dma.hbm_to_vmem [thread:$0]  %s834_s0, 128, %s18_s20, [#allocation3]  }
  0x19   :  { %s693_s26 = scalar_lea.vmem %s40_s22, 128  ;;  %p698_p11 = scmp.lt.s32.totalorder %s40_s22, %s40_s22 }
  0x1a   :  { %p694_p10 = scmp.ne.s32.totalorder %s40_s22, %s693_s26  ;;  %p699_p12 = scmp.lt.s32.totalorder %s693_s26, %s693_s26 }
  0x1c   :  { %p700_p13 = por %p699_p12, %p698_p11 }
  0x1e   :  { %p701_p0 = pnand %p700_p13, %p694_p10 }
  0x20   :  { %704 = shalt.err (!%p701_p0)
}
  0x21   :  { %42 = dma.hbm_to_vmem [thread:$0]  %s836_s2, 128, %s40_s22, [#allocation6]  }
  0x22   :  { %725 = dma.done.wait [#allocation3], 128  }
  0x23   :  { %726 = vsyncadd [#allocation3], 4294967168 }
  0x24   :  { %727 = dma.done.wait [#allocation6], 6272  }
  0x25   :  { %728 = vsyncadd [#allocation6], 4294961024  ;;  %v736_v0 = vmov 0.0   ;;  %vm737_vm0 = vmmov 0   ;;  %v99_v1 = vld [vmem:[#allocation5 + $0x78] sm:$0xff]  ;;  %v98_v2 = vld [vmem:[#allocation5 + $0x70] sm:$0xff]  ;;  %v74_v35 = vlaneseq }
  0x26   :  { %520 = vmatprep.subr.mxu0 %v736_v0  ;;  %552 = vmatprep.mubr.msk.f32.mxu0 %vm737_vm0, %v736_v0  ;;  %v97_v3 = vld [vmem:[#allocation5 + $0x68] sm:$0xff]  ;;  %v96_v4 = vld [vmem:[#allocation5 + $0x60] sm:$0xff]  ;;  %v52_v5 = vld [vmem:[#allocation2] sm:$0xff]  ;;  %s738_s0 = smov [#allocation8]  }
  0x27   :  { %555 = vmatprep.subr.mxu1 %v736_v0  ;;  %587 = vmatprep.mubr.msk.f32.mxu1 %vm737_vm0, %v736_v0  ;;  %v95_v6 = vld [vmem:[#allocation5 + $0x58] sm:$0xff]  ;;  %v55_v7 = vrot.slane %v52_v5, 4  ;;  %v94_v8 = vld [vmem:[#allocation5 + $0x50] sm:$0xff]  ;;  %v93_v10 = vld [vmem:[#allocation5 + $0x48] sm:$0xff]  ;;  %v75_v36 = vshrl.u32 %v74_v35, 7  ;;  %s458_s2 = sshll.u32 %s738_s0, 4  ;;  %s459_s2 = int_to_ptr.vmem [resolvable:$true] %s458_s2 }
  0x28   :  { %521 = vmatpush3.msra.mxu0 %v99_v1  ;;  %v92_v12 = vld [vmem:[#allocation5 + $0x40] sm:$0xff]  ;;  %v91_v14 = vld [vmem:[#allocation5 + $0x38] sm:$0xff]  ;;  %v90_v16 = vld [vmem:[#allocation5 + $0x30] sm:$0xff]  ;;  %s705_s28 = scalar_lea.vmem %s459_s2, 128  ;;  %p710_p2 = scmp.lt.s32.totalorder %s459_s2, %s459_s2 }
  0x29   :  { %522 = vmatprep.subr.mxu0 %v736_v0  ;;  %v56_v9 = vadd.f32 %v55_v7, %v52_v5  ;;  %v89_v18 = vld [vmem:[#allocation5 + $0x28] sm:$0xff]  ;;  %v88_v20 = vld [vmem:[#allocation5 + $0x20] sm:$0xff]  ;;  %v87_v22 = vld [vmem:[#allocation5 + $0x18] sm:$0xff]  ;;  %v790_v38 = vsub.s32 0, %v75_v36  ;;  %p706_p1 = scmp.ne.s32.totalorder %s459_s2, %s705_s28  ;;  %p711_p3 = scmp.lt.s32.totalorder %s705_s28, %s705_s28 }
  0x2a   :  { %523 = vmatpush3.msra.mxu0 %v98_v2  ;;  %v86_v24 = vld [vmem:[#allocation5 + $0x10] sm:$0xff]  ;;  %v85_v26 = vld [vmem:[#allocation5 + $0x8] sm:$0xff]  ;;  %v84_v28 = vld [vmem:[#allocation5] sm:$0xff] }
  0x2b   :  { %524 = vmatprep.subr.mxu0 %v736_v0  ;;  %v57_v11 = vrot.slane %v56_v9, 2  ;;  %v53_v37 = vld [vmem:[#allocation7] sm:$0x1]  ;;  %v468_v42 = vld [vmem:[#allocation7 + $0x1] ss:$0 sm:$0xff]  ;;  %v222_v45 = vld [vmem:[#allocation5 + $0xf8] sm:$0xff]  ;;  %p712_p4 = por %p711_p3, %p710_p2 }
  0x2c   :  { %525 = vmatpush3.msra.mxu0 %v97_v3  ;;  %556 = vmatpush3.msra.mxu1 %v222_v45  ;;  %v221_v46 = vld [vmem:[#allocation5 + $0xf0] sm:$0xff]  ;;  %v220_v47 = vld [vmem:[#allocation5 + $0xe8] sm:$0xff]  ;;  %v219_v48 = vld [vmem:[#allocation5 + $0xe0] sm:$0xff] }
  0x2d   :  { %526 = vmatprep.subr.mxu0 %v736_v0  ;;  %v58_v13 = vadd.f32 %v57_v11, %v56_v9  ;;  %557 = vmatprep.subr.mxu1 %v736_v0  ;;  %v218_v49 = vld [vmem:[#allocation5 + $0xd8] sm:$0xff]  ;;  %v217_v50 = vld [vmem:[#allocation5 + $0xd0] sm:$0xff]  ;;  %v216_v51 = vld [vmem:[#allocation5 + $0xc8] sm:$0xff]  ;;  %p713_p5 = pnand %p712_p4, %p706_p1 }
  0x2e   :  { %527 = vmatpush3.msra.mxu0 %v96_v4  ;;  %558 = vmatpush3.msra.mxu1 %v221_v46  ;;  %v215_v52 = vld [vmem:[#allocation5 + $0xc0] sm:$0xff]  ;;  %v214_v53 = vld [vmem:[#allocation5 + $0xb8] sm:$0xff]  ;;  %v213_v54 = vld [vmem:[#allocation5 + $0xb0] sm:$0xff] }
  0x2f   :  { %528 = vmatprep.subr.mxu0 %v736_v0  ;;  %v59_v15 = vrot.slane %v58_v13, 1  ;;  %559 = vmatprep.subr.mxu1 %v736_v0  ;;  %v212_v55 = vld [vmem:[#allocation5 + $0xa8] sm:$0xff]  ;;  %v211_v56 = vld [vmem:[#allocation5 + $0xa0] sm:$0xff]  ;;  %v210_v57 = vld [vmem:[#allocation5 + $0x98] sm:$0xff] }
  0x30   :  { %529 = vmatpush3.msra.mxu0 %v95_v6  ;;  %560 = vmatpush3.msra.mxu1 %v220_v47  ;;  %v209_v58 = vld [vmem:[#allocation5 + $0x90] sm:$0xff]  ;;  %v208_v59 = vld [vmem:[#allocation5 + $0x88] sm:$0xff]  ;;  %v207_v60 = vld [vmem:[#allocation5 + $0x80] sm:$0xff] }
  0x31   :  { %530 = vmatprep.subr.mxu0 %v736_v0  ;;  %v60_v17 = vadd.f32 %v59_v15, %v58_v13  ;;  %561 = vmatprep.subr.mxu1 %v736_v0  ;;  %v340_v35 = vld [vmem:[#allocation5 + $0x150] sm:$0xff]  ;;  %v339_v36 = vld [vmem:[#allocation5 + $0x148] sm:$0xff]  ;;  %v330_v46 = vld [vmem:[#allocation5 + $0x100] sm:$0xff] }
  0x32   :  { %531 = vmatpush3.msra.mxu0 %v94_v8  ;;  %562 = vmatpush3.msra.mxu1 %v219_v48  ;;  %v331_v45 = vld [vmem:[#allocation5 + $0x108] sm:$0xff] }
  0x33   :  { %532 = vmatprep.subr.mxu0 %v736_v0  ;;  %v61_v19 = vmul.f32 0.125, %v60_v17  ;;  %563 = vmatprep.subr.mxu1 %v736_v0 }
  0x34   :  { %533 = vmatpush3.msra.mxu0 %v93_v10  ;;  %564 = vmatpush3.msra.mxu1 %v218_v49 }
  0x35   :  { %534 = vmatprep.subr.mxu0 %v736_v0  ;;  %v62_v21 = vsub.f32 %v52_v5, %v61_v19  ;;  %565 = vmatprep.subr.mxu1 %v736_v0  ;;  %v170_v19 = vld [vmem:[#allocation7 + $0x2] sm:$0x1] }
  0x36   :  { %535 = vmatpush3.msra.mxu0 %v92_v12  ;;  %566 = vmatpush3.msra.mxu1 %v217_v50 }
  0x37   :  { %536 = vmatprep.subr.mxu0 %v736_v0  ;;  %v63_v23 = vmul.f32 %v62_v21, %v62_v21  ;;  %567 = vmatprep.subr.mxu1 %v736_v0 }
  0x38   :  { %537 = vmatpush3.msra.mxu0 %v91_v14  ;;  %568 = vmatpush3.msra.mxu1 %v216_v51 }
  0x39   :  { %538 = vmatprep.subr.mxu0 %v736_v0  ;;  %v64_v25 = vrot.slane %v63_v23, 4  ;;  %569 = vmatprep.subr.mxu1 %v736_v0 }
  0x3a   :  { %539 = vmatpush3.msra.mxu0 %v90_v16  ;;  %570 = vmatpush3.msra.mxu1 %v215_v52 }
  0x3b   :  { %540 = vmatprep.subr.mxu0 %v736_v0  ;;  %v65_v27 = vadd.f32 %v64_v25, %v63_v23  ;;  %571 = vmatprep.subr.mxu1 %v736_v0 }
  0x3c   :  { %541 = vmatpush3.msra.mxu0 %v89_v18  ;;  %572 = vmatpush3.msra.mxu1 %v214_v53 }
  0x3d   :  { %542 = vmatprep.subr.mxu0 %v736_v0  ;;  %v66_v29 = vrot.slane %v65_v27, 2  ;;  %573 = vmatprep.subr.mxu1 %v736_v0 }
  0x3e   :  { %543 = vmatpush3.msra.mxu0 %v88_v20  ;;  %574 = vmatpush3.msra.mxu1 %v213_v54 }
  0x3f   :  { %544 = vmatprep.subr.mxu0 %v736_v0  ;;  %v67_v30 = vadd.f32 %v66_v29, %v65_v27  ;;  %575 = vmatprep.subr.mxu1 %v736_v0 }
  0x40   :  { %545 = vmatpush3.msra.mxu0 %v87_v22  ;;  %576 = vmatpush3.msra.mxu1 %v212_v55  ;;  %v171_v22 = vld [vmem:[#allocation7 + $0x3] sm:$0x1] }
  0x41   :  { %546 = vmatprep.subr.mxu0 %v736_v0  ;;  %v68_v31 = vrot.slane %v67_v30, 1  ;;  %577 = vmatprep.subr.mxu1 %v736_v0 }
  0x42   :  { %547 = vmatpush3.msra.mxu0 %v86_v24  ;;  %578 = vmatpush3.msra.mxu1 %v211_v56 }
  0x43   :  { %548 = vmatprep.subr.mxu0 %v736_v0  ;;  %v69_v32 = vadd.f32 %v68_v31, %v67_v30  ;;  %579 = vmatprep.subr.mxu1 %v736_v0  ;;  %v345_v30 = vld [vmem:[#allocation5 + $0x178] sm:$0xff]  ;;  %v344_v31 = vld [vmem:[#allocation5 + $0x170] sm:$0xff] }
  0x44   :  { %549 = vmatpush3.msra.mxu0 %v85_v26  ;;  %580 = vmatpush3.msra.mxu1 %v210_v57 }
  0x45   :  { %550 = vmatprep.subr.mxu0 %v736_v0  ;;  %v70_v33 = vmul.f32 0.125, %v69_v32  ;;  %581 = vmatprep.subr.mxu1 %v736_v0  ;;  %v343_v32 = vld [vmem:[#allocation5 + $0x168] sm:$0xff] }
  0x46   :  { %551 = vmatpush3.msra.mxu0 %v84_v28  ;;  %582 = vmatpush3.msra.mxu1 %v209_v58 }
  0x47   :  { %590 = vmatprep.subr.mxu0 %v736_v0  ;;  %v71_v34 = vadd.f32 1e-06, %v70_v33  ;;  %583 = vmatprep.subr.mxu1 %v736_v0  ;;  %v342_v33 = vld [vmem:[#allocation5 + $0x160] sm:$0xff] }
  0x48   :  { %584 = vmatpush3.msra.mxu1 %v208_v59 }
  0x49   :  { %633 = vrsqrt.f32 %v71_v34  ;;  %585 = vmatprep.subr.mxu1 %v736_v0  ;;  %v341_v34 = vld [vmem:[#allocation5 + $0x158] sm:$0xff] }
  0x4a   :  { %586 = vmatpush3.msra.mxu1 %v207_v60 }
  0x56   :  { %v634_v39 = vpop.eup %633 }
  0x57   :  { %v73_v40 = vmul.f32 %v634_v39, %v53_v37  ;;  %v338_v37 = vld [vmem:[#allocation5 + $0x140] sm:$0xff]  ;;  %v337_v39 = vld [vmem:[#allocation5 + $0x138] sm:$0xff] }
  0x59   :  { %v77_v41 = vrot.slane %v73_v40, %v790_v38  ;;  %v336_v40 = vld [vmem:[#allocation5 + $0x130] sm:$0xff] }
  0x5b   :  { %v78_v43 = vmul.f32 %v77_v41, %v62_v21  ;;  %v335_v41 = vld [vmem:[#allocation5 + $0x128] sm:$0xff] }
  0x5d   :  { %v83_v44 = vadd.f32 %v468_v42, %v78_v43  ;;  %v334_v42 = vld [vmem:[#allocation5 + $0x120] sm:$0xff]  ;;  %v333_v43 = vld [vmem:[#allocation5 + $0x118] sm:$0xff] }
  0x5f   :  { %553 = vmatmul.mubr.f32.vlgmr.msra.gmra.mxu0 %v83_v44  ;;  %v332_v44 = vld [vmem:[#allocation5 + $0x110] sm:$0xff] }
  0x60   :  { %622 = vmatprep.mubr.msk.f32.mxu0 %vm737_vm0, %v736_v0  ;;  %591 = vmatpush3.msra.mxu0 %v345_v30 }
  0x61   :  { %592 = vmatprep.subr.mxu0 %v736_v0 }
  0x62   :  { %593 = vmatpush3.msra.mxu0 %v344_v31 }
  0x63   :  { %594 = vmatprep.subr.mxu0 %v736_v0 }
  0x64   :  { %595 = vmatpush3.msra.mxu0 %v343_v32 }
  0x65   :  { %596 = vmatprep.subr.mxu0 %v736_v0 }
  0x66   :  { %597 = vmatpush3.msra.mxu0 %v342_v33 }
  0x67   :  { %598 = vmatprep.subr.mxu0 %v736_v0 }
  0x68   :  { %599 = vmatpush3.msra.mxu0 %v341_v34 }
  0x69   :  { %600 = vmatprep.subr.mxu0 %v736_v0 }
  0x6a   :  { %601 = vmatpush3.msra.mxu0 %v340_v35 }
  0x6b   :  { %602 = vmatprep.subr.mxu0 %v736_v0 }
  0x6c   :  { %603 = vmatpush3.msra.mxu0 %v339_v36  ;;  %v416_v36 = vld [vmem:[#allocation7 + $0x6] sm:$0x1] }
  0x6d   :  { %604 = vmatprep.subr.mxu0 %v736_v0 }
  0x6e   :  { %605 = vmatpush3.msra.mxu0 %v338_v37 }
  0x6f   :  { %606 = vmatprep.subr.mxu0 %v736_v0 }
  0x70   :  { %607 = vmatpush3.msra.mxu0 %v337_v39 }
  0x71   :  { %608 = vmatprep.subr.mxu0 %v736_v0 }
  0x72   :  { %609 = vmatpush3.msra.mxu0 %v336_v40  ;;  %v417_v40 = vld [vmem:[#allocation7 + $0x7] sm:$0x1] }
  0x73   :  { %610 = vmatprep.subr.mxu0 %v736_v0 }
  0x74   :  { %611 = vmatpush3.msra.mxu0 %v335_v41 }
  0x75   :  { %612 = vmatprep.subr.mxu0 %v736_v0 }
  0x76   :  { %613 = vmatpush3.msra.mxu0 %v334_v42 }
  0x77   :  { %614 = vmatprep.subr.mxu0 %v736_v0 }
  0x78   :  { %615 = vmatpush3.msra.mxu0 %v333_v43 }
  0x79   :  { %616 = vmatprep.subr.mxu0 %v736_v0 }
  0x7a   :  { %617 = vmatpush3.msra.mxu0 %v332_v44 }
  0x7b   :  { %618 = vmatprep.subr.mxu0 %v736_v0 }
  0x7c   :  { %619 = vmatpush3.msra.mxu0 %v331_v45 }
  0x7d   :  { %620 = vmatprep.subr.mxu0 %v736_v0 }
  0x7e   :  { %621 = vmatpush3.msra.mxu0 %v330_v46 }
 0x11f   :  { %v166_v61 = vpop.f32.mrf.mxu0 }
 0x120   :  { %v172_v62 = vrot.slane %v166_v61, 4  ;;  %v178_v63 = vmul.f32 %v166_v61, %v166_v61 }
 0x121   :  { %v554_v1 = vpop.f32.mrf.mxu0 }
 0x122   :  { %v173_v2 = vadd.f32 %v172_v62, %v166_v61  ;;  %v179_v3 = vrot.slane %v178_v63, 4 }
 0x124   :  { %v174_v4 = vrot.slane %v173_v2, 2  ;;  %v180_v5 = vadd.f32 %v179_v3, %v178_v63 }
 0x126   :  { %v175_v6 = vadd.f32 %v174_v4, %v173_v2  ;;  %v181_v7 = vrot.slane %v180_v5, 2  ;;  %v293_v4 = vld [vmem:[#allocation7 + $0x4] sm:$0x1] }
 0x128   :  { %v176_v8 = vrot.slane %v175_v6, 1  ;;  %v182_v9 = vadd.f32 %v181_v7, %v180_v5  ;;  %v294_v7 = vld [vmem:[#allocation7 + $0x5] sm:$0x1] }
 0x12a   :  { %v177_v10 = vadd.f32 %v176_v8, %v175_v6  ;;  %v183_v11 = vrot.slane %v182_v9, 1 }
 0x12c   :  { %v184_v12 = vadd.f32 %v183_v11, %v182_v9  ;;  %v185_v13 = vmul.f32 0.125, %v177_v10 }
 0x12e   :  { %v186_v14 = vmul.f32 0.125, %v184_v12  ;;  %v187_v15 = vmul.f32 %v185_v13, %v185_v13 }
 0x130   :  { %v188_v16 = vsub.f32 %v186_v14, %v187_v15 }
 0x132   :  { %v189_v17 = vmax.f32 %v188_v16, 0.0 }
 0x134   :  { %v190_v18 = vadd.f32 1e-06, %v189_v17 }
 0x136   :  { %635 = vrsqrt.f32 %v190_v18 }
 0x143   :  { %v636_v20 = vpop.eup %635 }
 0x144   :  { %v192_v21 = vmul.f32 %v636_v20, %v170_v19 }
 0x146   :  { %v193_v23 = vmul.f32 %v192_v21, %v185_v13  ;;  %v198_v24 = vrot.slane %v192_v21, %v790_v38 }
 0x148   :  { %v194_v25 = vsub.f32 %v171_v22, %v193_v23  ;;  %v199_v26 = vmul.f32 %v198_v24, %v166_v61 }
 0x14a   :  { %v203_v27 = vrot.slane %v194_v25, %v790_v38 }
 0x14c   :  { %v204_v28 = vadd.f32 %v203_v27, %v199_v26 }
 0x14e   :  { %637 = vtanh.f32 %v204_v28 }
 0x15b   :  { %v638_v29 = vpop.eup %637 }
 0x15c   :  { %588 = vmatmul.mubr.f32.vlgmr.msra.gmra.mxu1 %v638_v29 }
 0x21c   :  { %v289_v47 = vpop.f32.mrf.mxu1 }
 0x21d   :  { %v295_v48 = vrot.slane %v289_v47, 4  ;;  %v301_v49 = vmul.f32 %v289_v47, %v289_v47 }
 0x21e   :  { %v589_v50 = vpop.f32.mrf.mxu1 }
 0x21f   :  { %v296_v51 = vadd.f32 %v295_v48, %v289_v47  ;;  %v302_v52 = vrot.slane %v301_v49, 4 }
 0x221   :  { %v297_v53 = vrot.slane %v296_v51, 2  ;;  %v303_v54 = vadd.f32 %v302_v52, %v301_v49 }
 0x223   :  { %v298_v55 = vadd.f32 %v297_v53, %v296_v51  ;;  %v304_v56 = vrot.slane %v303_v54, 2 }
 0x225   :  { %v299_v57 = vrot.slane %v298_v55, 1  ;;  %v305_v58 = vadd.f32 %v304_v56, %v303_v54 }
 0x227   :  { %v300_v59 = vadd.f32 %v299_v57, %v298_v55  ;;  %v306_v60 = vrot.slane %v305_v58, 1 }
 0x229   :  { %v307_v61 = vadd.f32 %v306_v60, %v305_v58  ;;  %v308_v62 = vmul.f32 0.125, %v300_v59 }
 0x22b   :  { %v309_v63 = vmul.f32 0.125, %v307_v61  ;;  %v310_v1 = vmul.f32 %v308_v62, %v308_v62 }
 0x22d   :  { %v311_v0 = vsub.f32 %v309_v63, %v310_v1 }
 0x22f   :  { %v312_v2 = vmax.f32 %v311_v0, 0.0 }
 0x231   :  { %v313_v3 = vadd.f32 1e-06, %v312_v2 }
 0x233   :  { %639 = vrsqrt.f32 %v313_v3 }
 0x240   :  { %v640_v5 = vpop.eup %639 }
 0x241   :  { %v315_v6 = vmul.f32 %v640_v5, %v293_v4 }
 0x243   :  { %v316_v8 = vmul.f32 %v315_v6, %v308_v62  ;;  %v321_v9 = vrot.slane %v315_v6, %v790_v38 }
 0x245   :  { %v317_v10 = vsub.f32 %v294_v7, %v316_v8  ;;  %v322_v11 = vmul.f32 %v321_v9, %v289_v47 }
 0x247   :  { %v326_v12 = vrot.slane %v317_v10, %v790_v38 }
 0x249   :  { %v327_v13 = vadd.f32 %v326_v12, %v322_v11 }
 0x24b   :  { %641 = vtanh.f32 %v327_v13 }
 0x258   :  { %v642_v14 = vpop.eup %641 }
 0x259   :  { %623 = vmatmul.mubr.f32.vlgmr.msra.gmra.mxu0 %v642_v14 }
 0x319   :  { %v412_v15 = vpop.f32.mrf.mxu0 }
 0x31a   :  { %v418_v16 = vrot.slane %v412_v15, 4  ;;  %v424_v17 = vmul.f32 %v412_v15, %v412_v15 }
 0x31b   :  { %v624_v18 = vpop.f32.mrf.mxu0 }
 0x31c   :  { %v419_v19 = vadd.f32 %v418_v16, %v412_v15  ;;  %v425_v20 = vrot.slane %v424_v17, 4 }
 0x31e   :  { %v420_v21 = vrot.slane %v419_v19, 2  ;;  %v426_v22 = vadd.f32 %v425_v20, %v424_v17 }
 0x320   :  { %v421_v23 = vadd.f32 %v420_v21, %v419_v19  ;;  %v427_v24 = vrot.slane %v426_v22, 2 }
 0x322   :  { %v422_v25 = vrot.slane %v421_v23, 1  ;;  %v428_v26 = vadd.f32 %v427_v24, %v426_v22 }
 0x324   :  { %v423_v27 = vadd.f32 %v422_v25, %v421_v23  ;;  %v429_v28 = vrot.slane %v428_v26, 1 }
 0x326   :  { %v430_v29 = vadd.f32 %v429_v28, %v428_v26  ;;  %v431_v30 = vmul.f32 0.125, %v423_v27 }
 0x328   :  { %v432_v31 = vmul.f32 0.125, %v430_v29  ;;  %v433_v32 = vmul.f32 %v431_v30, %v431_v30 }
 0x32a   :  { %v434_v33 = vsub.f32 %v432_v31, %v433_v32 }
 0x32c   :  { %v435_v34 = vmax.f32 %v434_v33, 0.0 }
 0x32e   :  { %v436_v35 = vadd.f32 1e-06, %v435_v34 }
 0x330   :  { %643 = vrsqrt.f32 %v436_v35 }
 0x33d   :  { %v644_v37 = vpop.eup %643 }
 0x33e   :  { %v438_v39 = vmul.f32 %v644_v37, %v416_v36 }
 0x340   :  { %v439_v41 = vmul.f32 %v438_v39, %v431_v30  ;;  %v444_v42 = vrot.slane %v438_v39, %v790_v38 }
 0x342   :  { %v440_v43 = vsub.f32 %v417_v40, %v439_v41  ;;  %v445_v44 = vmul.f32 %v444_v42, %v412_v15 }
 0x344   :  { %v449_v45 = vrot.slane %v440_v43, %v790_v38 }
 0x346   :  { %v450_v46 = vadd.f32 %v449_v45, %v445_v44 }
 0x348   :  { %451 = vst [vmem:[#allocation8] sm:$0xff] %v450_v46 }
 0x349   :  { %716 = shalt.err (!%p713_p5)
}
 0x34a   :  { %461 = dma.vmem_to_hbm [thread:$0]  %s459_s2, 128, %s837_s3, [#allocation4]  }
 0x34b   :  { %729 = dma.done.wait [#allocation4], 128  }
 0x34c   :  { %730 = vsyncadd [#allocation4], 4294967168 }
 0x34d   :  { %465 = vsyncpa [#allocation3], 1 }
 0x34e   :  { %466 = vsyncpa [#allocation6], 1 }
 0x34f   :  { %467 = vsyncpa [#allocation4], 1 }

</bundles_post_ra>
